<compile_context>
chip_gen: v7x
topology: tpu7x:2x2x1
jax: 0.10.0
libtpu: 0.0.40
codegen_flags: <defaults>
</compile_context>

<pallas_src>
import math

import jax
import jax.numpy as jnp
from jax import lax
from jax.experimental import pallas as pl
from jax.experimental.pallas import tpu as pltpu

# ----- synthetic CodeBERT-ish config (small) -----
VOCAB = 64
PAD_ID = 1          # RoBERTa pad token id
SEQ = 8
HIDDEN = 32
N_HEADS = 2
HEAD_DIM = HIDDEN // N_HEADS
FFN = 4 * HIDDEN
NUM_LABELS = 2
LN_EPS = 1e-5
LANE_PAD = 128      # lane-dense output width


def _layer_norm(x, g, b):
    mu = jnp.mean(x, axis=-1, keepdims=True)
    var = jnp.mean((x - mu) ** 2, axis=-1, keepdims=True)
    return (x - mu) * lax.rsqrt(var + LN_EPS) * g + b


# ---------------------------------------------------------------------------
# Single fused Pallas kernel: encoder layer + classification head + loss.
# All arrays fit comfortably in VMEM at these sizes, so the kernel runs as one
# grid step with full-array blocks (no pipelining overhead).
# ---------------------------------------------------------------------------
def _model_kernel(x_ref, bias_ref, labels_ref,
                  wq_ref, bq_ref, wk_ref, bk_ref, wv_ref, bv_ref,
                  wo_ref, bo_ref, ln1g_ref, ln1b_ref,
                  w1_ref, b1_ref, w2_ref, b2_ref, ln2g_ref, ln2b_ref,
                  wd_ref, bd_ref, wp_ref, bp_ref,
                  prob_ref, loss_ref):
    x = x_ref[...]                       # (N, H) f32, N = B*S
    bias = bias_ref[...]                 # (N, N) f32 additive attention mask
    n = x.shape[0]
    b = labels_ref.shape[0]
    s = n // b

    xb = x.astype(jnp.bfloat16)
    # Q/K/V projections: one (N,H)x(H,H) MXU matmul each, bias added once.
    q = jnp.dot(xb, wq_ref[...], preferred_element_type=jnp.float32) + bq_ref[...]
    k = jnp.dot(xb, wk_ref[...], preferred_element_type=jnp.float32) + bk_ref[...]
    v = jnp.dot(xb, wv_ref[...], preferred_element_type=jnp.float32) + bv_ref[...]

    # Pre-scale Q once (N,H) instead of scaling each per-head (N,N) score tile.
    q = q * jnp.float32(1.0 / math.sqrt(HEAD_DIM))

    ctx_heads = []
    for h in range(N_HEADS):             # short static loop, fully unrolled
        lo, hi = h * HEAD_DIM, (h + 1) * HEAD_DIM
        qh = q[:, lo:hi].astype(jnp.bfloat16)
        kh = k[:, lo:hi].astype(jnp.bfloat16)
        vh = v[:, lo:hi].astype(jnp.bfloat16)
        # scores[i, j] = qh[i, :] . kh[j, :]  (block-diag + pad mask via bias)
        scores = lax.dot_general(qh, kh, (((1,), (1,)), ((), ())),
                                 preferred_element_type=jnp.float32) + bias
        m = jnp.max(scores, axis=-1, keepdims=True)
        p = jnp.exp(scores - m)
        p = p * pl.reciprocal(jnp.sum(p, axis=-1, keepdims=True), approx=True)
        ctx_heads.append(jnp.dot(p.astype(jnp.bfloat16), vh,
                                 preferred_element_type=jnp.float32))
    ctx = jnp.concatenate(ctx_heads, axis=-1)                       # (N, H) f32
    attn = jnp.dot(ctx.astype(jnp.bfloat16), wo_ref[...],
                   preferred_element_type=jnp.float32) + bo_ref[...]

    h1 = _layer_norm(x + attn, ln1g_ref[...], ln1b_ref[...])
    ff = jnp.dot(h1.astype(jnp.bfloat16), w1_ref[...],
                 preferred_element_type=jnp.float32) + b1_ref[...]
    ff = jax.nn.gelu(ff)
    ff = jnp.dot(ff.astype(jnp.bfloat16), w2_ref[...],
                 preferred_element_type=jnp.float32) + b2_ref[...]
    h2 = _layer_norm(h1 + ff, ln2g_ref[...], ln2b_ref[...])        # (N, H)

    # CLS token rows (flattened index b*s) — static slices, no HBM round-trip.
    cls = jnp.concatenate([h2[i * s:i * s + 1, :] for i in range(b)], axis=0)

    # Classification head (dropout from the PyTorch model is identity in eval).
    hcls = jnp.tanh(jnp.dot(cls.astype(jnp.bfloat16), wd_ref[...],
                            preferred_element_type=jnp.float32) + bd_ref[...])
    logits = jnp.dot(hcls.astype(jnp.bfloat16), wp_ref[...],
                     preferred_element_type=jnp.float32) + bp_ref[...]
    prob = jax.nn.sigmoid(logits)                                   # (B, NUM_LABELS)

    labels = labels_ref[...]                                        # (B, 1)
    p0 = prob[:, 0:1]
    ll = jnp.log(p0 + 1e-10) * labels + jnp.log(1.0 - p0 + 1e-10) * (1.0 - labels)
    loss11 = -jnp.sum(ll, axis=0, keepdims=True) / jnp.float32(b)   # (1, 1)

    # Lane-dense stores: pad to 128 lanes (sliced back in the wrapper).
    prob_ref[...] = jnp.concatenate(
        [prob, jnp.zeros((b, LANE_PAD - NUM_LABELS), jnp.float32)], axis=1)
    loss_ref[...] = jnp.broadcast_to(loss11, (1, LANE_PAD))


def _run_model(x_flat, bias, labels, p):
    bsz = labels.shape[0]

    def bf16(w):
        return w.astype(jnp.bfloat16)

    args = [
        x_flat, bias, labels,
        bf16(p['wq']), p['bq'], bf16(p['wk']), p['bk'], bf16(p['wv']), p['bv'],
        bf16(p['wo']), p['bo'], p['ln1_g'], p['ln1_b'],
        bf16(p['w1']), p['b1'], bf16(p['w2']), p['b2'], p['ln2_g'], p['ln2_b'],
        bf16(p['wd']), p['bd'], bf16(p['wp']), p['bp'],
    ]
    # Single invocation, whole arrays resident in VMEM (tiny model).
    return pl.pallas_call(
        _model_kernel,
        out_shape=(jax.ShapeDtypeStruct((bsz, LANE_PAD), jnp.float32),
                   jax.ShapeDtypeStruct((1, LANE_PAD), jnp.float32)),
    )(*args)


# ---------------------------------------------------------------------------
# Parameter init (deterministic, synthetic) and forward wrapper.
# ---------------------------------------------------------------------------
def init_params(key):
    ks = jax.random.split(key, 12)

    def norm(k, shape, scale=0.02):
        return (scale * jax.random.normal(k, shape)).astype(jnp.float32)

    return {
        'word_emb': norm(ks[0], (VOCAB, HIDDEN)),
        'pos_emb': norm(ks[1], (SEQ, HIDDEN)),
        # per-head projections: columns grouped by head
        'wq': norm(ks[2], (HIDDEN, HIDDEN)),
        'bq': jnp.zeros((1, HIDDEN), jnp.float32),
        'wk': norm(ks[3], (HIDDEN, HIDDEN)),
        'bk': jnp.zeros((1, HIDDEN), jnp.float32),
        'wv': norm(ks[4], (HIDDEN, HIDDEN)),
        'bv': jnp.zeros((1, HIDDEN), jnp.float32),
        'wo': norm(ks[5], (HIDDEN, HIDDEN)),
        'bo': jnp.zeros((1, HIDDEN), jnp.float32),
        'ln1_g': jnp.ones((1, HIDDEN), jnp.float32),
        'ln1_b': jnp.zeros((1, HIDDEN), jnp.float32),
        'w1': norm(ks[6], (HIDDEN, FFN)),
        'b1': jnp.zeros((1, FFN), jnp.float32),
        'w2': norm(ks[7], (FFN, HIDDEN)),
        'b2': jnp.zeros((1, HIDDEN), jnp.float32),
        'ln2_g': jnp.ones((1, HIDDEN), jnp.float32),
        'ln2_b': jnp.zeros((1, HIDDEN), jnp.float32),
        'wd': norm(ks[8], (HIDDEN, HIDDEN)),
        'bd': jnp.zeros((1, HIDDEN), jnp.float32),
        'wp': norm(ks[9], (HIDDEN, NUM_LABELS)),
        'bp': jnp.zeros((1, NUM_LABELS), jnp.float32),
    }


@jax.jit
def codebert_defect_forward(input_ids, labels, params):
    B, S = input_ids.shape
    N = B * S
    # attention_mask = input_ids.ne(pad_token_id)
    attention_mask = (input_ids != PAD_ID).astype(jnp.float32)            # (B, S)
    # Additive mask: block-diagonal over batch (so batches can be fused into
    # one (B*S, H) slab) AND key-side padding mask, -1e9 on disallowed pairs.
    key_valid = attention_mask.reshape(N)
    batch_ids = jnp.repeat(jnp.arange(B), S)
    allowed = (batch_ids[:, None] == batch_ids[None, :]) & (key_valid[None, :] > 0.5)
    bias = jnp.where(allowed, 0.0, -1e9).astype(jnp.float32)              # (N, N)

    # encoder: embeddings (glue) + fused Pallas transformer layer + cls head
    x = params['word_emb'][input_ids] + params['pos_emb'][None, :, :]     # (B, S, H)
    x_flat = x.reshape(N, HIDDEN)
    labels_f = labels.astype(jnp.float32).reshape(B, 1)
    # TODO(synk): nn.Dropout(args.dropout_probability) is identity in eval mode.
    prob_pad, loss_pad = _run_model(x_flat, bias, labels_f, params)
    prob = prob_pad[:, :NUM_LABELS]
    loss = loss_pad[0, 0]
    return loss, prob


if __name__ == "__main__":
    key = jax.random.PRNGKey(0)
    pk, ik = jax.random.split(key, 2)
    params = init_params(pk)

    B = 2
    input_ids = jax.random.randint(ik, (B, SEQ), 0, VOCAB, dtype=jnp.int32)
    input_ids = input_ids.at[:, -2:].set(PAD_ID)   # pad tail so the mask matters
    labels = jnp.array([0, 1], dtype=jnp.int32)

    loss, prob = codebert_defect_forward(input_ids, labels, params)
    jax.block_until_ready((loss, prob))
    assert prob.shape == (B, NUM_LABELS) and loss.shape == ()
    assert bool(jnp.isfinite(loss)) and bool(jnp.all(jnp.isfinite(prob)))
    print("KERNEL_OK")
</pallas_src>

<mosaic_0001>
module attributes {stable_mosaic.version = 11 : i64} {
  func.func @_model_kernel(%arg0: memref<16x32xf32, #tpu.memory_space<vmem>>, %arg1: memref<16x16xf32, #tpu.memory_space<vmem>>, %arg2: memref<2x1xf32, #tpu.memory_space<vmem>>, %arg3: memref<32x32xbf16, #tpu.memory_space<vmem>>, %arg4: memref<1x32xf32, #tpu.memory_space<vmem>>, %arg5: memref<32x32xbf16, #tpu.memory_space<vmem>>, %arg6: memref<1x32xf32, #tpu.memory_space<vmem>>, %arg7: memref<32x32xbf16, #tpu.memory_space<vmem>>, %arg8: memref<1x32xf32, #tpu.memory_space<vmem>>, %arg9: memref<32x32xbf16, #tpu.memory_space<vmem>>, %arg10: memref<1x32xf32, #tpu.memory_space<vmem>>, %arg11: memref<1x32xf32, #tpu.memory_space<vmem>>, %arg12: memref<1x32xf32, #tpu.memory_space<vmem>>, %arg13: memref<32x128xbf16, #tpu.memory_space<vmem>>, %arg14: memref<1x128xf32, #tpu.memory_space<vmem>>, %arg15: memref<128x32xbf16, #tpu.memory_space<vmem>>, %arg16: memref<1x32xf32, #tpu.memory_space<vmem>>, %arg17: memref<1x32xf32, #tpu.memory_space<vmem>>, %arg18: memref<1x32xf32, #tpu.memory_space<vmem>>, %arg19: memref<32x32xbf16, #tpu.memory_space<vmem>>, %arg20: memref<1x32xf32, #tpu.memory_space<vmem>>, %arg21: memref<32x2xbf16, #tpu.memory_space<vmem>>, %arg22: memref<1x2xf32, #tpu.memory_space<vmem>>, %arg23: memref<2x128xf32, #tpu.memory_space<vmem>>, %arg24: memref<1x128xf32, #tpu.memory_space<vmem>>) attributes {dimension_semantics = [], scalar_prefetch = 0 : i64, scratch_operands = 0 : i64, tpu.core_type = #tpu.core_type<tc>} {
    %c0 = arith.constant 0 : index
    %c0_0 = arith.constant 0 : index
    %0 = vector.load %arg0[%c0, %c0_0] : memref<16x32xf32, #tpu.memory_space<vmem>>, vector<16x32xf32>
    %c0_1 = arith.constant 0 : index
    %c0_2 = arith.constant 0 : index
    %1 = vector.load %arg1[%c0_1, %c0_2] : memref<16x16xf32, #tpu.memory_space<vmem>>, vector<16x16xf32>
    %2 = arith.truncf %0 : vector<16x32xf32> to vector<16x32xbf16>
    %c0_3 = arith.constant 0 : index
    %c0_4 = arith.constant 0 : index
    %3 = vector.load %arg3[%c0_3, %c0_4] : memref<32x32xbf16, #tpu.memory_space<vmem>>, vector<32x32xbf16>
    %cst = arith.constant dense<0.000000e+00> : vector<16x32xf32>
    %4 = tpu.matmul %2, %3, %cst {dimension_numbers = #tpu.dot_dimension_numbers<[1], [0], [0], [1], [0, 0, 1, 1], [], []>} : vector<16x32xbf16>, vector<32x32xbf16>, vector<16x32xf32> -> vector<16x32xf32>
    %c0_5 = arith.constant 0 : index
    %c0_6 = arith.constant 0 : index
    %5 = vector.load %arg4[%c0_5, %c0_6] : memref<1x32xf32, #tpu.memory_space<vmem>>, vector<1x32xf32>
    %6 = vector.broadcast %5 : vector<1x32xf32> to vector<16x32xf32>
    %7 = arith.addf %4, %6 : vector<16x32xf32>
    %c0_7 = arith.constant 0 : index
    %c0_8 = arith.constant 0 : index
    %8 = vector.load %arg5[%c0_7, %c0_8] : memref<32x32xbf16, #tpu.memory_space<vmem>>, vector<32x32xbf16>
    %cst_9 = arith.constant dense<0.000000e+00> : vector<16x32xf32>
    %9 = tpu.matmul %2, %8, %cst_9 {dimension_numbers = #tpu.dot_dimension_numbers<[1], [0], [0], [1], [0, 0, 1, 1], [], []>} : vector<16x32xbf16>, vector<32x32xbf16>, vector<16x32xf32> -> vector<16x32xf32>
    %c0_10 = arith.constant 0 : index
    %c0_11 = arith.constant 0 : index
    %10 = vector.load %arg6[%c0_10, %c0_11] : memref<1x32xf32, #tpu.memory_space<vmem>>, vector<1x32xf32>
    %11 = vector.broadcast %10 : vector<1x32xf32> to vector<16x32xf32>
    %12 = arith.addf %9, %11 : vector<16x32xf32>
    %c0_12 = arith.constant 0 : index
    %c0_13 = arith.constant 0 : index
    %13 = vector.load %arg7[%c0_12, %c0_13] : memref<32x32xbf16, #tpu.memory_space<vmem>>, vector<32x32xbf16>
    %cst_14 = arith.constant dense<0.000000e+00> : vector<16x32xf32>
    %14 = tpu.matmul %2, %13, %cst_14 {dimension_numbers = #tpu.dot_dimension_numbers<[1], [0], [0], [1], [0, 0, 1, 1], [], []>} : vector<16x32xbf16>, vector<32x32xbf16>, vector<16x32xf32> -> vector<16x32xf32>
    %c0_15 = arith.constant 0 : index
    %c0_16 = arith.constant 0 : index
    %15 = vector.load %arg8[%c0_15, %c0_16] : memref<1x32xf32, #tpu.memory_space<vmem>>, vector<1x32xf32>
    %16 = vector.broadcast %15 : vector<1x32xf32> to vector<16x32xf32>
    %17 = arith.addf %14, %16 : vector<16x32xf32>
    %cst_17 = arith.constant 2.500000e-01 : f32
    %18 = vector.broadcast %cst_17 : f32 to vector<16x32xf32>
    %19 = arith.mulf %7, %18 : vector<16x32xf32>
    %20 = vector.extract_strided_slice %19 {offsets = [0, 0], sizes = [16, 16], strides = [1, 1]} : vector<16x32xf32> to vector<16x16xf32>
    %21 = arith.truncf %20 : vector<16x16xf32> to vector<16x16xbf16>
    %22 = vector.extract_strided_slice %12 {offsets = [0, 0], sizes = [16, 16], strides = [1, 1]} : vector<16x32xf32> to vector<16x16xf32>
    %23 = arith.truncf %22 : vector<16x16xf32> to vector<16x16xbf16>
    %24 = vector.extract_strided_slice %17 {offsets = [0, 0], sizes = [16, 16], strides = [1, 1]} : vector<16x32xf32> to vector<16x16xf32>
    %25 = arith.truncf %24 : vector<16x16xf32> to vector<16x16xbf16>
    %cst_18 = arith.constant dense<0.000000e+00> : vector<16x16xf32>
    %26 = tpu.matmul %21, %23, %cst_18 {dimension_numbers = #tpu.dot_dimension_numbers<[1], [1], [0], [0], [0, 0, 1, 0], [], []>} : vector<16x16xbf16>, vector<16x16xbf16>, vector<16x16xf32> -> vector<16x16xf32>
    %27 = arith.addf %26, %1 : vector<16x16xf32>
    %cst_19 = arith.constant dense<0xFF800000> : vector<16xf32>
    %28 = vector.multi_reduction <maximumf>, %27, %cst_19 [1] : vector<16x16xf32> to vector<16xf32>
    %29 = vector.shape_cast %28 : vector<16xf32> to vector<16x1xf32>
    %30 = vector.broadcast %29 : vector<16x1xf32> to vector<16x16xf32>
    %31 = arith.subf %27, %30 : vector<16x16xf32>
    %32 = math.exp %31 : vector<16x16xf32>
    %cst_20 = arith.constant dense<0.000000e+00> : vector<16xf32>
    %33 = vector.multi_reduction <add>, %32, %cst_20 [1] : vector<16x16xf32> to vector<16xf32>
    %34 = vector.shape_cast %33 : vector<16xf32> to vector<16x1xf32>
    %35 = tpu.reciprocal %34 {approx = true} : vector<16x1xf32> -> vector<16x1xf32>
    %36 = vector.broadcast %35 : vector<16x1xf32> to vector<16x16xf32>
    %37 = arith.mulf %32, %36 : vector<16x16xf32>
    %38 = arith.truncf %37 : vector<16x16xf32> to vector<16x16xbf16>
    %cst_21 = arith.constant dense<0.000000e+00> : vector<16x16xf32>
    %39 = tpu.matmul %38, %25, %cst_21 {dimension_numbers = #tpu.dot_dimension_numbers<[1], [0], [0], [1], [0, 0, 1, 1], [], []>} : vector<16x16xbf16>, vector<16x16xbf16>, vector<16x16xf32> -> vector<16x16xf32>
    %40 = vector.extract_strided_slice %19 {offsets = [0, 16], sizes = [16, 16], strides = [1, 1]} : vector<16x32xf32> to vector<16x16xf32>
    %41 = arith.truncf %40 : vector<16x16xf32> to vector<16x16xbf16>
    %42 = vector.extract_strided_slice %12 {offsets = [0, 16], sizes = [16, 16], strides = [1, 1]} : vector<16x32xf32> to vector<16x16xf32>
    %43 = arith.truncf %42 : vector<16x16xf32> to vector<16x16xbf16>
    %44 = vector.extract_strided_slice %17 {offsets = [0, 16], sizes = [16, 16], strides = [1, 1]} : vector<16x32xf32> to vector<16x16xf32>
    %45 = arith.truncf %44 : vector<16x16xf32> to vector<16x16xbf16>
    %cst_22 = arith.constant dense<0.000000e+00> : vector<16x16xf32>
    %46 = tpu.matmul %41, %43, %cst_22 {dimension_numbers = #tpu.dot_dimension_numbers<[1], [1], [0], [0], [0, 0, 1, 0], [], []>} : vector<16x16xbf16>, vector<16x16xbf16>, vector<16x16xf32> -> vector<16x16xf32>
    %47 = arith.addf %46, %1 : vector<16x16xf32>
    %cst_23 = arith.constant dense<0xFF800000> : vector<16xf32>
    %48 = vector.multi_reduction <maximumf>, %47, %cst_23 [1] : vector<16x16xf32> to vector<16xf32>
    %49 = vector.shape_cast %48 : vector<16xf32> to vector<16x1xf32>
    %50 = vector.broadcast %49 : vector<16x1xf32> to vector<16x16xf32>
    %51 = arith.subf %47, %50 : vector<16x16xf32>
    %52 = math.exp %51 : vector<16x16xf32>
    %cst_24 = arith.constant dense<0.000000e+00> : vector<16xf32>
    %53 = vector.multi_reduction <add>, %52, %cst_24 [1] : vector<16x16xf32> to vector<16xf32>
    %54 = vector.shape_cast %53 : vector<16xf32> to vector<16x1xf32>
    %55 = tpu.reciprocal %54 {approx = true} : vector<16x1xf32> -> vector<16x1xf32>
    %56 = vector.broadcast %55 : vector<16x1xf32> to vector<16x16xf32>
    %57 = arith.mulf %52, %56 : vector<16x16xf32>
    %58 = arith.truncf %57 : vector<16x16xf32> to vector<16x16xbf16>
    %cst_25 = arith.constant dense<0.000000e+00> : vector<16x16xf32>
    %59 = tpu.matmul %58, %45, %cst_25 {dimension_numbers = #tpu.dot_dimension_numbers<[1], [0], [0], [1], [0, 0, 1, 1], [], []>} : vector<16x16xbf16>, vector<16x16xbf16>, vector<16x16xf32> -> vector<16x16xf32>
    %60 = tpu.concatenate %39, %59 in 1 : vector<16x16xf32>, vector<16x16xf32> -> vector<16x32xf32>
    %61 = arith.truncf %60 : vector<16x32xf32> to vector<16x32xbf16>
    %c0_26 = arith.constant 0 : index
    %c0_27 = arith.constant 0 : index
    %62 = vector.load %arg9[%c0_26, %c0_27] : memref<32x32xbf16, #tpu.memory_space<vmem>>, vector<32x32xbf16>
    %cst_28 = arith.constant dense<0.000000e+00> : vector<16x32xf32>
    %63 = tpu.matmul %61, %62, %cst_28 {dimension_numbers = #tpu.dot_dimension_numbers<[1], [0], [0], [1], [0, 0, 1, 1], [], []>} : vector<16x32xbf16>, vector<32x32xbf16>, vector<16x32xf32> -> vector<16x32xf32>
    %c0_29 = arith.constant 0 : index
    %c0_30 = arith.constant 0 : index
    %64 = vector.load %arg10[%c0_29, %c0_30] : memref<1x32xf32, #tpu.memory_space<vmem>>, vector<1x32xf32>
    %65 = vector.broadcast %64 : vector<1x32xf32> to vector<16x32xf32>
    %66 = arith.addf %63, %65 : vector<16x32xf32>
    %67 = arith.addf %0, %66 : vector<16x32xf32>
    %c0_31 = arith.constant 0 : index
    %c0_32 = arith.constant 0 : index
    %68 = vector.load %arg11[%c0_31, %c0_32] : memref<1x32xf32, #tpu.memory_space<vmem>>, vector<1x32xf32>
    %c0_33 = arith.constant 0 : index
    %c0_34 = arith.constant 0 : index
    %69 = vector.load %arg12[%c0_33, %c0_34] : memref<1x32xf32, #tpu.memory_space<vmem>>, vector<1x32xf32>
    %cst_35 = arith.constant dense<0.000000e+00> : vector<16xf32>
    %70 = vector.multi_reduction <add>, %67, %cst_35 [1] : vector<16x32xf32> to vector<16xf32>
    %71 = vector.shape_cast %70 : vector<16xf32> to vector<16x1xf32>
    %cst_36 = arith.constant 3.200000e+01 : f32
    %72 = vector.broadcast %cst_36 : f32 to vector<16x1xf32>
    %73 = arith.divf %71, %72 : vector<16x1xf32>
    %74 = vector.broadcast %73 : vector<16x1xf32> to vector<16x32xf32>
    %75 = arith.subf %67, %74 : vector<16x32xf32>
    %76 = arith.mulf %75, %75 : vector<16x32xf32>
    %cst_37 = arith.constant dense<0.000000e+00> : vector<16xf32>
    %77 = vector.multi_reduction <add>, %76, %cst_37 [1] : vector<16x32xf32> to vector<16xf32>
    %78 = vector.shape_cast %77 : vector<16xf32> to vector<16x1xf32>
    %cst_38 = arith.constant 3.200000e+01 : f32
    %79 = vector.broadcast %cst_38 : f32 to vector<16x1xf32>
    %80 = arith.divf %78, %79 : vector<16x1xf32>
    %81 = vector.broadcast %73 : vector<16x1xf32> to vector<16x32xf32>
    %82 = arith.subf %67, %81 : vector<16x32xf32>
    %cst_39 = arith.constant 9.99999974E-6 : f32
    %83 = vector.broadcast %cst_39 : f32 to vector<16x1xf32>
    %84 = arith.addf %80, %83 : vector<16x1xf32>
    %85 = math.rsqrt %84 : vector<16x1xf32>
    %86 = vector.broadcast %85 : vector<16x1xf32> to vector<16x32xf32>
    %87 = arith.mulf %82, %86 : vector<16x32xf32>
    %88 = vector.broadcast %68 : vector<1x32xf32> to vector<16x32xf32>
    %89 = arith.mulf %87, %88 : vector<16x32xf32>
    %90 = vector.broadcast %69 : vector<1x32xf32> to vector<16x32xf32>
    %91 = arith.addf %89, %90 : vector<16x32xf32>
    %92 = arith.truncf %91 : vector<16x32xf32> to vector<16x32xbf16>
    %c0_40 = arith.constant 0 : index
    %c0_41 = arith.constant 0 : index
    %93 = vector.load %arg13[%c0_40, %c0_41] : memref<32x128xbf16, #tpu.memory_space<vmem>>, vector<32x128xbf16>
    %cst_42 = arith.constant dense<0.000000e+00> : vector<16x128xf32>
    %94 = tpu.matmul %92, %93, %cst_42 {dimension_numbers = #tpu.dot_dimension_numbers<[1], [0], [0], [1], [0, 0, 1, 1], [], []>} : vector<16x32xbf16>, vector<32x128xbf16>, vector<16x128xf32> -> vector<16x128xf32>
    %c0_43 = arith.constant 0 : index
    %c0_44 = arith.constant 0 : index
    %95 = vector.load %arg14[%c0_43, %c0_44] : memref<1x128xf32, #tpu.memory_space<vmem>>, vector<1x128xf32>
    %96 = vector.broadcast %95 : vector<1x128xf32> to vector<16x128xf32>
    %97 = arith.addf %94, %96 : vector<16x128xf32>
    %98 = arith.mulf %97, %97 : vector<16x128xf32>
    %99 = arith.mulf %97, %98 : vector<16x128xf32>
    %cst_45 = arith.constant 4.471500e-02 : f32
    %100 = vector.broadcast %cst_45 : f32 to vector<16x128xf32>
    %101 = arith.mulf %100, %99 : vector<16x128xf32>
    %102 = arith.addf %97, %101 : vector<16x128xf32>
    %cst_46 = arith.constant 0.797884583 : f32
    %103 = vector.broadcast %cst_46 : f32 to vector<16x128xf32>
    %104 = arith.mulf %103, %102 : vector<16x128xf32>
    %105 = math.tanh %104 : vector<16x128xf32>
    %cst_47 = arith.constant 1.000000e+00 : f32
    %106 = vector.broadcast %cst_47 : f32 to vector<16x128xf32>
    %107 = arith.addf %106, %105 : vector<16x128xf32>
    %cst_48 = arith.constant 5.000000e-01 : f32
    %108 = vector.broadcast %cst_48 : f32 to vector<16x128xf32>
    %109 = arith.mulf %108, %107 : vector<16x128xf32>
    %110 = arith.mulf %97, %109 : vector<16x128xf32>
    %111 = arith.truncf %110 : vector<16x128xf32> to vector<16x128xbf16>
    %c0_49 = arith.constant 0 : index
    %c0_50 = arith.constant 0 : index
    %112 = vector.load %arg15[%c0_49, %c0_50] : memref<128x32xbf16, #tpu.memory_space<vmem>>, vector<128x32xbf16>
    %cst_51 = arith.constant dense<0.000000e+00> : vector<16x32xf32>
    %113 = tpu.matmul %111, %112, %cst_51 {dimension_numbers = #tpu.dot_dimension_numbers<[1], [0], [0], [1], [0, 0, 1, 1], [], []>} : vector<16x128xbf16>, vector<128x32xbf16>, vector<16x32xf32> -> vector<16x32xf32>
    %c0_52 = arith.constant 0 : index
    %c0_53 = arith.constant 0 : index
    %114 = vector.load %arg16[%c0_52, %c0_53] : memref<1x32xf32, #tpu.memory_space<vmem>>, vector<1x32xf32>
    %115 = vector.broadcast %114 : vector<1x32xf32> to vector<16x32xf32>
    %116 = arith.addf %113, %115 : vector<16x32xf32>
    %117 = arith.addf %91, %116 : vector<16x32xf32>
    %c0_54 = arith.constant 0 : index
    %c0_55 = arith.constant 0 : index
    %118 = vector.load %arg17[%c0_54, %c0_55] : memref<1x32xf32, #tpu.memory_space<vmem>>, vector<1x32xf32>
    %c0_56 = arith.constant 0 : index
    %c0_57 = arith.constant 0 : index
    %119 = vector.load %arg18[%c0_56, %c0_57] : memref<1x32xf32, #tpu.memory_space<vmem>>, vector<1x32xf32>
    %cst_58 = arith.constant dense<0.000000e+00> : vector<16xf32>
    %120 = vector.multi_reduction <add>, %117, %cst_58 [1] : vector<16x32xf32> to vector<16xf32>
    %121 = vector.shape_cast %120 : vector<16xf32> to vector<16x1xf32>
    %cst_59 = arith.constant 3.200000e+01 : f32
    %122 = vector.broadcast %cst_59 : f32 to vector<16x1xf32>
    %123 = arith.divf %121, %122 : vector<16x1xf32>
    %124 = vector.broadcast %123 : vector<16x1xf32> to vector<16x32xf32>
    %125 = arith.subf %117, %124 : vector<16x32xf32>
    %126 = arith.mulf %125, %125 : vector<16x32xf32>
    %cst_60 = arith.constant dense<0.000000e+00> : vector<16xf32>
    %127 = vector.multi_reduction <add>, %126, %cst_60 [1] : vector<16x32xf32> to vector<16xf32>
    %128 = vector.shape_cast %127 : vector<16xf32> to vector<16x1xf32>
    %cst_61 = arith.constant 3.200000e+01 : f32
    %129 = vector.broadcast %cst_61 : f32 to vector<16x1xf32>
    %130 = arith.divf %128, %129 : vector<16x1xf32>
    %131 = vector.broadcast %123 : vector<16x1xf32> to vector<16x32xf32>
    %132 = arith.subf %117, %131 : vector<16x32xf32>
    %cst_62 = arith.constant 9.99999974E-6 : f32
    %133 = vector.broadcast %cst_62 : f32 to vector<16x1xf32>
    %134 = arith.addf %130, %133 : vector<16x1xf32>
    %135 = math.rsqrt %134 : vector<16x1xf32>
    %136 = vector.broadcast %135 : vector<16x1xf32> to vector<16x32xf32>
    %137 = arith.mulf %132, %136 : vector<16x32xf32>
    %138 = vector.broadcast %118 : vector<1x32xf32> to vector<16x32xf32>
    %139 = arith.mulf %137, %138 : vector<16x32xf32>
    %140 = vector.broadcast %119 : vector<1x32xf32> to vector<16x32xf32>
    %141 = arith.addf %139, %140 : vector<16x32xf32>
    %142 = vector.extract_strided_slice %141 {offsets = [0, 0], sizes = [1, 32], strides = [1, 1]} : vector<16x32xf32> to vector<1x32xf32>
    %143 = vector.extract_strided_slice %141 {offsets = [8, 0], sizes = [1, 32], strides = [1, 1]} : vector<16x32xf32> to vector<1x32xf32>
    %144 = tpu.concatenate %142, %143 in 0 : vector<1x32xf32>, vector<1x32xf32> -> vector<2x32xf32>
    %145 = arith.truncf %144 : vector<2x32xf32> to vector<2x32xbf16>
    %c0_63 = arith.constant 0 : index
    %c0_64 = arith.constant 0 : index
    %146 = vector.load %arg19[%c0_63, %c0_64] : memref<32x32xbf16, #tpu.memory_space<vmem>>, vector<32x32xbf16>
    %cst_65 = arith.constant dense<0.000000e+00> : vector<2x32xf32>
    %147 = tpu.matmul %145, %146, %cst_65 {dimension_numbers = #tpu.dot_dimension_numbers<[1], [0], [0], [1], [0, 0, 1, 1], [], []>} : vector<2x32xbf16>, vector<32x32xbf16>, vector<2x32xf32> -> vector<2x32xf32>
    %c0_66 = arith.constant 0 : index
    %c0_67 = arith.constant 0 : index
    %148 = vector.load %arg20[%c0_66, %c0_67] : memref<1x32xf32, #tpu.memory_space<vmem>>, vector<1x32xf32>
    %149 = vector.broadcast %148 : vector<1x32xf32> to vector<2x32xf32>
    %150 = arith.addf %147, %149 : vector<2x32xf32>
    %151 = math.tanh %150 : vector<2x32xf32>
    %152 = arith.truncf %151 : vector<2x32xf32> to vector<2x32xbf16>
    %c0_68 = arith.constant 0 : index
    %c0_69 = arith.constant 0 : index
    %153 = vector.load %arg21[%c0_68, %c0_69] : memref<32x2xbf16, #tpu.memory_space<vmem>>, vector<32x2xbf16>
    %cst_70 = arith.constant dense<0.000000e+00> : vector<2x2xf32>
    %154 = tpu.matmul %152, %153, %cst_70 {dimension_numbers = #tpu.dot_dimension_numbers<[1], [0], [0], [1], [0, 0, 1, 1], [], []>} : vector<2x32xbf16>, vector<32x2xbf16>, vector<2x2xf32> -> vector<2x2xf32>
    %c0_71 = arith.constant 0 : index
    %c0_72 = arith.constant 0 : index
    %155 = vector.load %arg22[%c0_71, %c0_72] : memref<1x2xf32, #tpu.memory_space<vmem>>, vector<1x2xf32>
    %156 = vector.broadcast %155 : vector<1x2xf32> to vector<2x2xf32>
    %157 = arith.addf %154, %156 : vector<2x2xf32>
    %158 = arith.negf %157 : vector<2x2xf32>
    %159 = math.exp %158 : vector<2x2xf32>
    %cst_73 = arith.constant 1.000000e+00 : f32
    %160 = vector.broadcast %cst_73 : f32 to vector<2x2xf32>
    %161 = arith.addf %160, %159 : vector<2x2xf32>
    %162 = arith.divf %160, %161 : vector<2x2xf32>
    %c0_74 = arith.constant 0 : index
    %c0_75 = arith.constant 0 : index
    %163 = vector.load %arg2[%c0_74, %c0_75] : memref<2x1xf32, #tpu.memory_space<vmem>>, vector<2x1xf32>
    %164 = vector.extract_strided_slice %162 {offsets = [0, 0], sizes = [2, 1], strides = [1, 1]} : vector<2x2xf32> to vector<2x1xf32>
    %cst_76 = arith.constant 1.000000e-10 : f32
    %165 = vector.broadcast %cst_76 : f32 to vector<2x1xf32>
    %166 = arith.addf %164, %165 : vector<2x1xf32>
    %167 = math.log %166 : vector<2x1xf32>
    %168 = arith.mulf %167, %163 : vector<2x1xf32>
    %cst_77 = arith.constant 1.000000e+00 : f32
    %169 = vector.broadcast %cst_77 : f32 to vector<2x1xf32>
    %170 = arith.subf %169, %164 : vector<2x1xf32>
    %cst_78 = arith.constant 1.000000e-10 : f32
    %171 = vector.broadcast %cst_78 : f32 to vector<2x1xf32>
    %172 = arith.addf %170, %171 : vector<2x1xf32>
    %173 = math.log %172 : vector<2x1xf32>
    %cst_79 = arith.constant 1.000000e+00 : f32
    %174 = vector.broadcast %cst_79 : f32 to vector<2x1xf32>
    %175 = arith.subf %174, %163 : vector<2x1xf32>
    %176 = arith.mulf %173, %175 : vector<2x1xf32>
    %177 = arith.addf %168, %176 : vector<2x1xf32>
    %cst_80 = arith.constant dense<0.000000e+00> : vector<1xf32>
    %178 = vector.multi_reduction <add>, %177, %cst_80 [0] : vector<2x1xf32> to vector<1xf32>
    %179 = vector.shape_cast %178 : vector<1xf32> to vector<1x1xf32>
    %cst_81 = arith.constant 0.000000e+00 : f32
    %180 = vector.broadcast %cst_81 : f32 to vector<1x1xf32>
    %181 = arith.subf %180, %179 : vector<1x1xf32>
    %cst_82 = arith.constant 2.000000e+00 : f32
    %182 = vector.broadcast %cst_82 : f32 to vector<1x1xf32>
    %183 = arith.divf %181, %182 : vector<1x1xf32>
    %cst_83 = arith.constant 0.000000e+00 : f32
    %184 = vector.broadcast %cst_83 : f32 to vector<2x126xf32>
    %185 = tpu.concatenate %162, %184 in 1 : vector<2x2xf32>, vector<2x126xf32> -> vector<2x128xf32>
    %c0_84 = arith.constant 0 : index
    %c0_85 = arith.constant 0 : index
    %186 = vector.load %arg23[%c0_84, %c0_85] : memref<2x128xf32, #tpu.memory_space<vmem>>, vector<2x128xf32>
    tpu.vector_store %arg23[%c0_84, %c0_85], %185 {strides = array<i32>} : memref<2x128xf32, #tpu.memory_space<vmem>>, vector<2x128xf32>,
    %187 = vector.shape_cast %183 : vector<1x1xf32> to vector<1x1xf32>
    %188 = vector.broadcast %187 : vector<1x1xf32> to vector<1x128xf32>
    %c0_86 = arith.constant 0 : index
    %c0_87 = arith.constant 0 : index
    %189 = vector.load %arg24[%c0_86, %c0_87] : memref<1x128xf32, #tpu.memory_space<vmem>>, vector<1x128xf32>
    tpu.vector_store %arg24[%c0_86, %c0_87], %188 {strides = array<i32>} : memref<1x128xf32, #tpu.memory_space<vmem>>, vector<1x128xf32>,
    return
  }
}

</mosaic_0001>

<bundles_post_ra>
// kernel: codebert_defect_forward.1
= control target key start
LH: loop header
LB: loop body
LE: loop exit
PB: predicated region body
PF: predicated region fallthrough
CT: control target
= control target key end

     0   :  { %s1779_s0 = inlined_call_operand.vmem [shape: f32[16,32], index: 0, kind: input, shape index: {}]   ;;  %s1780_s1 = inlined_call_operand.vmem [shape: f32[16,16], index: 1, kind: input, shape index: {}]   ;;  %s1781_s2 = inlined_call_operand.vmem [shape: f32[2,1], index: 2, kind: input, shape index: {}]   ;;  %s1782_s3 = inlined_call_operand.vmem [shape: bf16[32,32], index: 3, kind: input, shape index: {}]   ;;  %s1783_s4 = inlined_call_operand.vmem [shape: f32[1,32], index: 4, kind: input, shape index: {}]   ;;  %s1784_s5 = inlined_call_operand.vmem [shape: bf16[32,32], index: 5, kind: input, shape index: {}]   ;;  %s1785_s6 = inlined_call_operand.vmem [shape: f32[1,32], index: 6, kind: input, shape index: {}]   ;;  %s1786_s7 = inlined_call_operand.vmem [shape: bf16[32,32], index: 7, kind: input, shape index: {}]   ;;  %s1787_s8 = inlined_call_operand.vmem [shape: f32[1,32], index: 8, kind: input, shape index: {}]   ;;  %s1788_s9 = inlined_call_operand.vmem [shape: bf16[32,32], index: 9, kind: input, shape index: {}]   ;;  %s1789_s10 = inlined_call_operand.vmem [shape: f32[1,32], index: 10, kind: input, shape index: {}]   ;;  %s1790_s11 = inlined_call_operand.vmem [shape: f32[1,32], index: 11, kind: input, shape index: {}]   ;;  %s1791_s12 = inlined_call_operand.vmem [shape: f32[1,32], index: 12, kind: input, shape index: {}]   ;;  %s1792_s13 = inlined_call_operand.vmem [shape: bf16[32,128], index: 13, kind: input, shape index: {}]   ;;  %s1793_s14 = inlined_call_operand.vmem [shape: f32[1,128], index: 14, kind: input, shape index: {}]   ;;  %s1794_s15 = inlined_call_operand.vmem [shape: bf16[128,32], index: 15, kind: input, shape index: {}]   ;;  %s1795_s16 = inlined_call_operand.vmem [shape: f32[1,32], index: 16, kind: input, shape index: {}]   ;;  %s1796_s17 = inlined_call_operand.vmem [shape: f32[1,32], index: 17, kind: input, shape index: {}]   ;;  %s1797_s18 = inlined_call_operand.vmem [shape: f32[1,32], index: 18, kind: input, shape index: {}]   ;;  %s1798_s19 = inlined_call_operand.vmem [shape: bf16[32,32], index: 19, kind: input, shape index: {}]   ;;  %s1799_s20 = inlined_call_operand.vmem [shape: f32[1,32], index: 20, kind: input, shape index: {}]   ;;  %s1800_s21 = inlined_call_operand.vmem [shape: bf16[32,2], index: 21, kind: input, shape index: {}]   ;;  %s1801_s22 = inlined_call_operand.vmem [shape: f32[1,2], index: 22, kind: input, shape index: {}]   ;;  %s1802_s23 = inlined_call_operand.hbm [shape: f32[2,128], index: 23, kind: output, shape index: {0}]   ;;  %s1803_s24 = inlined_call_operand.hbm [shape: f32[1,128], index: 24, kind: output, shape index: {1}]  }
   0x1   :  { %1809 = sst [smem:[#allocation8_spill]] %s1779_s0 }
   0x2   :  { %1810 = sst [smem:[#allocation9_spill]] %s1780_s1 }
   0x3   :  { %1811 = sst [smem:[#allocation10_spill]] %s1781_s2 }
   0x4   :  { %1812 = sst [smem:[#allocation11_spill]] %s1782_s3 }
   0x5   :  { %1813 = sst [smem:[#allocation12_spill]] %s1783_s4 }
   0x6   :  { %1814 = sst [smem:[#allocation13_spill]] %s1784_s5 }
   0x7   :  { %1815 = sst [smem:[#allocation14_spill]] %s1785_s6 }
   0x8   :  { %1816 = sst [smem:[#allocation15_spill]] %s1786_s7 }
   0x9   :  { %1817 = sst [smem:[#allocation16_spill]] %s1787_s8 }
   0xa   :  { %30 = vsyncpa [#allocation3], 0  ;;  %s1818_s27 = sld [smem:[#allocation13_spill]]  ;;  %v1406_v1 = vmov 0.0   ;;  %s1819_s2 = sld [smem:[#allocation11_spill]]  ;;  %vm1407_vm0 = vmmov 0  }
   0xb   :  { %1192 = vmatprep.subr.bf16.mxu1 %v1406_v1  ;;  %1184 = vmatprep.subr.bf16.mxu0 %v1406_v1  ;;  %s1820_s3 = sld [smem:[#allocation8_spill]]  ;;  %vm107_vm1 = vcmask 261120  }
   0xc   :  { %1196 = vmatprep.mubr.msk.bf16.mxu1 %vm1407_vm0, %v1406_v1  ;;  %1188 = vmatprep.mubr.msk.bf16.mxu0 %vm1407_vm0, %v1406_v1 }
  0x10   :  { %v1298_v0 = vld [vmem:[%s1818_s27] sm:$0xff]   ;;  %v1300_v3 = vld [vmem:[%s1818_s27 + $0x8] sm:$0xff]  }
  0x11   :  { %v1299_v2 = vld [vmem:[%s1819_s2] sm:$0xff]   ;;  %1193 = vmatpush3.bf16.msra.mxu1 %v1298_v0  ;;  %v1560_v5 = vld [vmem:[%s1820_s3 + $0x8] sm:$0xff] }
  0x12   :  { %1194 = vmatprep.subr.bf16.mxu1 %v1406_v1  ;;  %1185 = vmatpush3.bf16.msra.mxu0 %v1299_v2  ;;  %v1555_v4 = vld [vmem:[%s1820_s3] sm:$0xff]  ;;  %v1301_v6 = vld [vmem:[%s1819_s2 + $0x8] sm:$0xff]  }
  0x13   :  { %1186 = vmatprep.subr.bf16.mxu0 %v1406_v1  ;;  %v83_v7 = vpack.c.bf16 %v1560_v5, %v1555_v4 }
  0x15   :  { %1195 = vmatpush3.bf16.msra.mxu1 %v1300_v3 }
  0x16   :  { %1187 = vmatpush3.bf16.msra.mxu0 %v1301_v6  ;;  %1208 = vmatprep.subr.bf16.mxu1 %v1406_v1 }
  0x17   :  { %1200 = vmatprep.subr.bf16.mxu0 %v1406_v1 }
  0x18   :  { %1197 = vmatmul.mubr.msk.bf16.vlgmr.msra.gmra.mrb[0].mxu1 %vm107_vm1, %v83_v7 }
  0x19   :  { %1189 = vmatmul.mubr.msk.bf16.vlgmr.msra.gmra.mrb[0].mxu0 %vm107_vm1, %v83_v7  ;;  %1210 = vmatprep.mubr.msk.bf16.mxu1 %vm1407_vm0, %v1406_v1 }
  0x1a   :  { %1204 = vmatprep.mubr.msk.bf16.mxu0 %vm1407_vm0, %v1406_v1 }
  0x1b   :  { %31 = vsyncpa [#allocation5], 0  ;;  %s1821_s27 = sld [smem:[#allocation12_spill]]  ;;  %s1822_s2 = sld [smem:[#allocation14_spill]]  ;;  %vm285_vm2 = vcmask 130048   ;;  %vm897_vm3 = vcmask 1040384  }
  0x1c   :  { %s1408_s29 = smov 112   ;;  %s1823_s30 = sld [smem:[#allocation15_spill]]  ;;  %vm1063_vm4 = vcmask 15360   ;;  %vm1052_vm5 = vcmask 1024  }
  0x1d   :  { %s1824_s1 = sld [smem:[#allocation9_spill]]  ;;  %s1825_s6 = sld [smem:[#allocation16_spill]] }
  0x21   :  { %v1100_v8 = vld [vmem:[%s1821_s27] ss:$0 sm:$0xff] }
  0x22   :  { %v1104_v9 = vld [vmem:[%s1822_s2] ss:$0 sm:$0xff]  ;;  %v1303_v28 = vld [vmem:[%s1823_s30 + $0x8] sm:$0xff]  }
  0x23   :  { %v1302_v27 = vld [vmem:[%s1823_s30] sm:$0xff]   ;;  %v82_v34 = vld [vmem:[%s1824_s1 + $0x8] sm:$0xff]  ;;  %s1409_s30 = smov 16  }
  0x24   :  { %1201 = vmatpush3.bf16.msra.mxu0 %v1302_v27  ;;  %v81_v32 = vld [vmem:[%s1824_s1] sm:$0xff] }
  0x25   :  { %1202 = vmatprep.subr.bf16.mxu0 %v1406_v1  ;;  %v1108_v63 = vld [vmem:[%s1825_s6] ss:$0 sm:$0xff] }
  0x28   :  { %1203 = vmatpush3.bf16.msra.mxu0 %v1303_v28 }
  0x29   :  { %1214 = vmatprep.subr.bf16.mxu0 %v1406_v1 }
  0x2b   :  { %1205 = vmatmul.mubr.msk.bf16.vlgmr.msra.gmra.mrb[4].mxu0 %vm107_vm1, %v83_v7 }
  0x2c   :  { %1216 = vmatprep.mubr.msk.bf16.mxu0 %vm1407_vm0, %v1406_v1 }
  0xeb   :  { %v209_v10 = vpop.f32.mrb[0].mxu1 }
  0xec   :  { %v1198_v11 = vpop.f32.mrb[1].mxu1  ;;  %v145_v12 = vpop.f32.mrb[0].mxu0  ;;  %v210_v16 = vadd.f32 %v1104_v9, %v209_v10 }
  0xed   :  { %v212_v13 = vpop.f32.mrb[2].mxu1  ;;  %v146_v14 = vadd.f32 %v1100_v8, %v145_v12  ;;  %v1190_v15 = vpop.f32.mrb[1].mxu0 }
  0xee   :  { %v213_v17 = vadd.f32 %v1104_v9, %v212_v13  ;;  %v1199_v18 = vpop.f32.mrb[3].mxu1  ;;  %v148_v19 = vpop.f32.mrb[2].mxu0 }
  0xef   :  { %v280_v20 = vmul.f32 0.25, %v146_v14  ;;  %v149_v21 = vadd.f32 %v1100_v8, %v148_v19  ;;  %v1191_v22 = vpop.f32.mrb[3].mxu0 }
  0xf0   :  { %v283_v23 = vpack.c.bf16 %v213_v17, %v210_v16 }
  0xf1   :  { %v281_v24 = vmul.f32 0.25, %v149_v21 }
  0xf2   :  { %404 = vrot.lane.b32.xlu0 %v283_v23, %s1408_s29  ;;  %v290_v25 = vsel %vm285_vm2, %v283_v23, 0 }
  0xf3   :  { %v282_v26 = vpack.c.bf16 %v281_v24, %v280_v20  ;;  %1209 = vmatpush3.bf16.xpose.msra.mxu1 %v290_v25 }
  0xf4   :  { %1220 = vmatprep.subr.bf16.mxu1 %v1406_v1 }
  0xf6   :  { %401 = vrot.lane.b32.xlu0 %v282_v26, %s1408_s29 }
  0xfa   :  { %1211 = vmatmul.mubr.msk.bf16.vlgmr.msra.gmra.mrb[4].mxu1 %vm285_vm2, %v282_v26 }
  0xfb   :  { %1222 = vmatprep.mubr.msk.bf16.mxu1 %vm1407_vm0, %v1406_v1 }
  0xfe   :  { %v273_v60 = vpop.f32.mrb[4].mxu0 }
  0xff   :  { %v1206_v61 = vpop.f32.mrb[5].mxu0  ;;  %v274_v2 = vadd.f32 %v1108_v63, %v273_v60 }
 0x100   :  { %v276_v62 = vpop.f32.mrb[6].mxu0 }
 0x101   :  { %v1207_v0 = vpop.f32.mrb[7].mxu0  ;;  %v277_v3 = vadd.f32 %v1108_v63, %v276_v62 }
 0x103   :  { %v284_v6 = vpack.c.bf16 %v277_v3, %v274_v2 }
 0x105   :  { %1215 = vmatpush3.bf16.msra.mxu0 %v284_v6 }
 0x106   :  { %1226 = vmatprep.subr.bf16.mxu0 %v1406_v1 }
 0x164   :  { %v405_v29 = vpop.permute.xlu0 %404 }
 0x165   :  { %v410_v30 = vsel %vm285_vm2, %v405_v29, 0 }
 0x166   :  { %1221 = vmatpush3.bf16.xpose.msra.mxu1 %v410_v30 }
 0x167   :  { %1232 = vmatprep.subr.bf16.mxu1 %v1406_v1 }
 0x168   :  { %v402_v31 = vpop.permute.xlu0 %401 }
 0x16d   :  { %1223 = vmatmul.mubr.msk.bf16.vlgmr.msra.gmra.mrb[8].mxu1 %vm285_vm2, %v402_v31 }
 0x16e   :  { %1236 = vmatprep.mubr.msk.bf16.mxu1 %vm1407_vm0, %v1406_v1 }
 0x1cd   :  { %v326_v33 = vpop.f32.mrb[4].mxu1 }
 0x1ce   :  { %v327_v35 = vadd.f32 %v326_v33, %v81_v32  ;;  %v1212_v36 = vpop.f32.mrb[5].mxu1 }
 0x1cf   :  { %v329_v37 = vpop.f32.mrb[6].mxu1 }
 0x1d0   :  { %v330_v38 = vadd.f32 %v329_v37, %v82_v34  ;;  %v1213_v39 = vpop.f32.mrb[7].mxu1  ;;  %v333_v40 = vsel %vm285_vm2, %v327_v35, -inf  ;;  %v1305_v37 = vld [vmem:[%s1788_s9 + $0x8] sm:$0xff]  }
 0x1d1   :  { %334 = vmax.xlane.f32.xlu1 %v333_v40 }
 0x1d2   :  { %v336_v41 = vsel %vm285_vm2, %v330_v38, -inf }
 0x1d5   :  { %337 = vmax.xlane.f32.xlu1 %v336_v41 }
 0x240   :  { %v446_v42 = vpop.f32.mrb[8].mxu1 }
 0x241   :  { %v447_v43 = vadd.f32 %v446_v42, %v81_v32  ;;  %v1224_v44 = vpop.f32.mrb[9].mxu1  ;;  %v1304_v32 = vld [vmem:[%s1788_s9] sm:$0xff]   ;;  %s1411_s9 = smov [#allocation2]  }
 0x242   :  { %v449_v45 = vpop.f32.mrb[10].mxu1  ;;  %1233 = vmatpush3.bf16.msra.mxu1 %v1304_v32  ;;  %v1314_v32 = vld [vmem:[%s1794_s15 + $0x30] sm:$0xff]   ;;  %s1078_s3 = sshll.u32 %s1411_s9, 4  ;;  %s1079_s3 = int_to_ptr.vmem [resolvable:$true] %s1078_s3 }
 0x243   :  { %v450_v46 = vadd.f32 %v449_v45, %v82_v34  ;;  %v1225_v47 = vpop.f32.mrb[11].mxu1  ;;  %v453_v48 = vsel %vm285_vm2, %v447_v43, -inf  ;;  %1234 = vmatprep.subr.bf16.mxu1 %v1406_v1  ;;  %p1363_p1 = scmp.lt.s32.totalorder %s1079_s3, %s1079_s3 }
 0x244   :  { %454 = vmax.xlane.f32.xlu0 %v453_v48 }
 0x245   :  { %v456_v49 = vsel %vm285_vm2, %v450_v46, -inf }
 0x246   :  { %457 = vmax.xlane.f32.xlu1 %v456_v49  ;;  %1235 = vmatpush3.bf16.msra.mxu1 %v1305_v37  ;;  %v1116_v49 = vld [vmem:[%s1789_s10] ss:$0 sm:$0xff]  ;;  %s1358_s10 = scalar_lea.vmem %s1079_s3, 32 }
 0x247   :  { %1248 = vmatprep.subr.bf16.mxu1 %v1406_v1  ;;  %p1359_p0 = scmp.ne.s32.totalorder %s1079_s3, %s1358_s10  ;;  %p1364_p2 = scmp.lt.s32.totalorder %s1358_s10, %s1358_s10 }
 0x249   :  { %p1365_p3 = por %p1364_p2, %p1363_p1 }
 0x24b   :  { %p1366_p4 = pnand %p1365_p3, %p1359_p0 }
 0x25e   :  { %v335_v50 = vpop.xlane.xlu1 %334 }
 0x25f   :  { %v339_v51 = vsub.f32 %v327_v35, %v335_v50 }
 0x261   :  { %v341_v52 = vmul.f32 1.442695, %v339_v51 }
 0x262   :  { %v338_v53 = vpop.xlane.xlu1 %337 }
 0x263   :  { %1320 = vpow2.f32 %v341_v52  ;;  %v340_v54 = vsub.f32 %v330_v38, %v338_v53 }
 0x265   :  { %v343_v55 = vmul.f32 1.442695, %v340_v54 }
 0x267   :  { %1322 = vpow2.f32 %v343_v55 }
 0x26d   :  { %v1321_v56 = vpop.eup %1320 }
 0x26e   :  { %v345_v57 = vsel %vm285_vm2, %v1321_v56, 0.0 }
 0x26f   :  { %346 = vadd.xlane.f32.xlu1 %v345_v57 }
 0x271   :  { %v1323_v58 = vpop.eup %1322 }
 0x272   :  { %v348_v59 = vsel %vm285_vm2, %v1323_v58, 0.0 }
 0x273   :  { %349 = vadd.xlane.f32.xlu1 %v348_v59 }
 0x2d1   :  { %v455_v7 = vpop.xlane.xlu0 %454 }
 0x2d2   :  { %v459_v8 = vsub.f32 %v447_v43, %v455_v7 }
 0x2d3   :  { %v458_v9 = vpop.xlane.xlu1 %457 }
 0x2d4   :  { %v461_v10 = vmul.f32 1.442695, %v459_v8  ;;  %v460_v11 = vsub.f32 %v450_v46, %v458_v9  ;;  %v1307_v8 = vld [vmem:[%s1792_s13 + $0x8] sm:$0xff]  }
 0x2d6   :  { %1324 = vpow2.f32 %v461_v10  ;;  %v463_v12 = vmul.f32 1.442695, %v460_v11 }
 0x2d8   :  { %1326 = vpow2.f32 %v463_v12 }
 0x2e0   :  { %v1325_v13 = vpop.eup %1324 }
 0x2e1   :  { %v465_v14 = vsel %vm285_vm2, %v1325_v13, 0.0 }
 0x2e2   :  { %v1327_v15 = vpop.eup %1326  ;;  %466 = vadd.xlane.f32.xlu1 %v465_v14 }
 0x2e3   :  { %v468_v16 = vsel %vm285_vm2, %v1327_v15, 0.0 }
 0x2e6   :  { %469 = vadd.xlane.f32.xlu1 %v468_v16 }
 0x2f7   :  { %477 = vrot.lane.b32.xlu1 %v284_v6, %s1408_s29 }
 0x2fc   :  { %v347_v17 = vpop.xlane.xlu1 %346 }
 0x2fd   :  { %1328 = vrcp.f32 %v347_v17  ;;  %v1120_v17 = vld [vmem:[%s1790_s11] ss:$0 sm:$0xff] }
 0x300   :  { %v350_v18 = vpop.xlane.xlu1 %349 }
 0x301   :  { %1330 = vrcp.f32 %v350_v18 }
 0x307   :  { %v1329_v19 = vpop.eup %1328 }
 0x308   :  { %v353_v21 = vmul.f32 %v1329_v19, %v1321_v56 }
 0x30b   :  { %v1331_v20 = vpop.eup %1330 }
 0x30c   :  { %v354_v22 = vmul.f32 %v1331_v20, %v1323_v58 }
 0x30e   :  { %v355_v23 = vpack.c.bf16 %v354_v22, %v353_v21  ;;  %v1121_v21 = vld [vmem:[%s1791_s12] ss:$0 sm:$0xff] }
 0x310   :  { %1217 = vmatmul.mubr.msk.bf16.vlgmr.msra.gmra.mrb[8].mxu0 %vm285_vm2, %v355_v23 }
 0x311   :  { %1228 = vmatprep.mubr.msk.bf16.mxu0 %vm1407_vm0, %v1406_v1 }
 0x36f   :  { %v467_v24 = vpop.xlane.xlu1 %466 }
 0x370   :  { %1332 = vrcp.f32 %v467_v24 }
 0x373   :  { %v470_v25 = vpop.xlane.xlu1 %469 }
 0x374   :  { %1334 = vrcp.f32 %v470_v25 }
 0x377   :  { %v478_v26 = vpop.permute.xlu1 %477 }
 0x378   :  { %1227 = vmatpush3.bf16.msra.mxu0 %v478_v26  ;;  %v1308_v26 = vld [vmem:[%s1794_s15] sm:$0xff]  }
 0x379   :  { %1240 = vmatprep.subr.bf16.mxu0 %v1406_v1 }
 0x37a   :  { %v1333_v27 = vpop.eup %1332 }
 0x37b   :  { %v473_v29 = vmul.f32 %v1333_v27, %v1325_v13  ;;  %v1309_v27 = vld [vmem:[%s1794_s15 + $0x8] sm:$0xff]  }
 0x37e   :  { %v1335_v28 = vpop.eup %1334 }
 0x37f   :  { %v474_v30 = vmul.f32 %v1335_v28, %v1327_v15  ;;  %v1310_v28 = vld [vmem:[%s1794_s15 + $0x10] sm:$0xff]  }
 0x381   :  { %v475_v31 = vpack.c.bf16 %v474_v30, %v473_v29  ;;  %v1311_v29 = vld [vmem:[%s1794_s15 + $0x18] sm:$0xff]   ;;  %v1312_v30 = vld [vmem:[%s1794_s15 + $0x20] sm:$0xff]  }
 0x383   :  { %1229 = vmatmul.mubr.msk.bf16.vlgmr.msra.gmra.mrb[12].mxu0 %vm285_vm2, %v475_v31  ;;  %v1313_v31 = vld [vmem:[%s1794_s15 + $0x28] sm:$0xff]  }
 0x384   :  { %1244 = vmatprep.mubr.msk.bf16.mxu0 %vm1407_vm0, %v1406_v1 }
 0x3e3   :  { %v393_v33 = vpop.f32.mrb[8].mxu0 }
 0x3e4   :  { %v1218_v34 = vpop.f32.mrb[9].mxu0 }
 0x3e5   :  { %v396_v35 = vpop.f32.mrb[10].mxu0  ;;  %v1122_v34 = vld [vmem:[%s1793_s14] ss:$0 sm:$0xff] }
 0x3e6   :  { %v1219_v36 = vpop.f32.mrb[11].mxu0 }
 0x456   :  { %v517_v38 = vpop.f32.mrb[12].mxu0 }
 0x457   :  { %v1230_v39 = vpop.f32.mrb[13].mxu0 }
 0x458   :  { %v520_v40 = vpop.f32.mrb[14].mxu0 }
 0x459   :  { %v1291_v41 = vpack.i.bf16 %v520_v40, %v517_v38  ;;  %v1231_v42 = vpop.f32.mrb[15].mxu0 }
 0x45b   :  { %1292 = vrot.lane.b32.xlu0 %v1291_v41, %s1409_s30  ;;  %s1826_s30 = sld [smem:[#allocation10_spill]] }
 0x4cd   :  { %v1293_v43 = vpop.permute.xlu0 %1292 }
 0x4ce   :  { %v1295_v44 = vunpack.i.h.bf16 %v1293_v43  ;;  %v1294_v45 = vunpack.i.l.bf16 %v1293_v43 }
 0x4d0   :  { %v533_v46 = vsel %vm285_vm2, %v396_v35, %v1295_v44  ;;  %v532_v47 = vsel %vm285_vm2, %v393_v33, %v1294_v45  ;;  %v1315_v33 = vld [vmem:[%s1794_s15 + $0x38] sm:$0xff]  }
 0x4d1   :  { %v534_v48 = vpack.c.bf16 %v533_v46, %v532_v47 }
 0x4d3   :  { %1237 = vmatmul.mubr.msk.bf16.vlgmr.msra.gmra.mrb[12].mxu1 %vm107_vm1, %v534_v48 }
 0x4d4   :  { %1264 = vmatprep.mubr.msk.bf16.mxu1 %vm1407_vm0, %v1406_v1  ;;  %1249 = vmatpush3.bf16.msra.mxu1 %v1308_v26 }
 0x4d5   :  { %1250 = vmatprep.subr.bf16.mxu1 %v1406_v1 }
 0x4d8   :  { %1251 = vmatpush3.bf16.msra.mxu1 %v1309_v27 }
 0x4d9   :  { %1252 = vmatprep.subr.bf16.mxu1 %v1406_v1 }
 0x4dc   :  { %1253 = vmatpush3.bf16.msra.mxu1 %v1310_v28 }
 0x4dd   :  { %1254 = vmatprep.subr.bf16.mxu1 %v1406_v1 }
 0x4e0   :  { %1255 = vmatpush3.bf16.msra.mxu1 %v1311_v29  ;;  %v1135_v29 = vld [vmem:[%s1796_s17] ss:$0 sm:$0xff] }
 0x4e1   :  { %1256 = vmatprep.subr.bf16.mxu1 %v1406_v1 }
 0x4e4   :  { %1257 = vmatpush3.bf16.msra.mxu1 %v1312_v30 }
 0x4e5   :  { %1258 = vmatprep.subr.bf16.mxu1 %v1406_v1 }
 0x4e8   :  { %1259 = vmatpush3.bf16.msra.mxu1 %v1313_v31 }
 0x4e9   :  { %1260 = vmatprep.subr.bf16.mxu1 %v1406_v1 }
 0x4ec   :  { %1261 = vmatpush3.bf16.msra.mxu1 %v1314_v32 }
 0x4ed   :  { %1262 = vmatprep.subr.bf16.mxu1 %v1406_v1 }
 0x4f0   :  { %1263 = vmatpush3.bf16.msra.mxu1 %v1315_v33  ;;  %v1136_v33 = vld [vmem:[%s1797_s18] ss:$0 sm:$0xff] }
 0x5a6   :  { %v595_v50 = vpop.f32.mrb[12].mxu1 }
 0x5a7   :  { %v596_v51 = vadd.f32 %v1116_v49, %v595_v50  ;;  %v1238_v52 = vpop.f32.mrb[13].mxu1 }
 0x5a8   :  { %v598_v53 = vpop.f32.mrb[14].mxu1 }
 0x5a9   :  { %v599_v54 = vadd.f32 %v1116_v49, %v598_v53  ;;  %v1239_v55 = vpop.f32.mrb[15].mxu1  ;;  %v602_v56 = vadd.f32 %v596_v51, %v1555_v4 }
 0x5ab   :  { %v606_v57 = vsel %vm107_vm1, %v602_v56, 0.0  ;;  %v603_v58 = vadd.f32 %v599_v54, %v1560_v5  ;;  %v1306_v5 = vld [vmem:[%s1792_s13] sm:$0xff]  }
 0x5ac   :  { %607 = vadd.xlane.f32.xlu1 %v606_v57  ;;  %1241 = vmatpush3.bf16.msra.mxu0 %v1306_v5 }
 0x5ad   :  { %v609_v59 = vsel %vm107_vm1, %v603_v58, 0.0  ;;  %1242 = vmatprep.subr.bf16.mxu0 %v1406_v1 }
 0x5ae   :  { %610 = vadd.xlane.f32.xlu0 %v609_v59 }
 0x5b0   :  { %1243 = vmatpush3.bf16.msra.mxu0 %v1307_v8 }
 0x5b1   :  { %1268 = vmatprep.subr.bf16.mxu0 %v1406_v1 }
 0x639   :  { %v608_v60 = vpop.xlane.xlu1 %607 }
 0x63a   :  { %v613_v61 = vmul.f32 0.03125, %v608_v60  ;;  %v1126_v60 = vld [vmem:[%s1795_s16] ss:$0 sm:$0xff] }
 0x63b   :  { %v611_v62 = vpop.xlane.xlu0 %610 }
 0x63c   :  { %v615_v63 = vsub.f32 %v602_v56, %v613_v61  ;;  %v614_v0 = vmul.f32 0.03125, %v611_v62 }
 0x63e   :  { %v616_v2 = vsub.f32 %v603_v58, %v614_v0  ;;  %v617_v3 = vmul.f32 %v615_v63, %v615_v63 }
 0x640   :  { %v619_v6 = vsel %vm107_vm1, %v617_v3, 0.0  ;;  %v618_v7 = vmul.f32 %v616_v2, %v616_v2 }
 0x641   :  { %620 = vadd.xlane.f32.xlu1 %v619_v6 }
 0x642   :  { %v622_v4 = vsel %vm107_vm1, %v618_v7, 0.0 }
 0x645   :  { %623 = vadd.xlane.f32.xlu1 %v622_v4 }
 0x6ce   :  { %v621_v9 = vpop.xlane.xlu1 %620 }
 0x6cf   :  { %v625_v10 = vmul.f32 0.03125, %v621_v9 }
 0x6d1   :  { %v627_v11 = vadd.f32 1e-05, %v625_v10 }
 0x6d2   :  { %v624_v12 = vpop.xlane.xlu1 %623 }
 0x6d3   :  { %1336 = vrsqrt.f32 %v627_v11  ;;  %v626_v13 = vmul.f32 0.03125, %v624_v12 }
 0x6d5   :  { %v628_v14 = vadd.f32 1e-05, %v626_v13 }
 0x6d7   :  { %1338 = vrsqrt.f32 %v628_v14 }
 0x6dd   :  { %v1337_v15 = vpop.eup %1336 }
 0x6de   :  { %v631_v16 = vmul.f32 %v1337_v15, %v615_v63 }
 0x6e0   :  { %v639_v19 = vmul.f32 %v1120_v17, %v631_v16 }
 0x6e1   :  { %v1339_v18 = vpop.eup %1338 }
 0x6e2   :  { %v632_v20 = vmul.f32 %v1339_v18, %v616_v2  ;;  %v1669_v23 = vadd.f32 %v1121_v21, %v639_v19  ;;  %v1316_v18 = vld [vmem:[%s1798_s19] sm:$0xff]   ;;  %v1317_v19 = vld [vmem:[%s1798_s19 + $0x8] sm:$0xff]  }
 0x6e4   :  { %v640_v22 = vmul.f32 %v1120_v17, %v632_v20 }
 0x6e6   :  { %v1671_v24 = vadd.f32 %v1121_v21, %v640_v22 }
 0x6e8   :  { %v649_v25 = vpack.c.bf16 %v1671_v24, %v1669_v23 }
 0x6ea   :  { %1245 = vmatmul.mubr.msk.bf16.vlgmr.msra.gmra.mrb[16].mxu0 %vm107_vm1, %v649_v25 }
 0x6eb   :  { %1272 = vmatprep.mubr.msk.bf16.mxu0 %vm1407_vm0, %v1406_v1  ;;  %1269 = vmatpush3.bf16.msra.mxu0 %v1316_v18 }
 0x6ec   :  { %1270 = vmatprep.subr.bf16.mxu0 %v1406_v1 }
 0x6ef   :  { %1271 = vmatpush3.bf16.msra.mxu0 %v1317_v19 }
 0x6f0   :  { %1276 = vmatprep.subr.bf16.mxu0 %v1406_v1 }
 0x7bd   :  { %v710_v35 = vpop.f32.mrb[16].mxu0 }
 0x7be   :  { %v711_v36 = vadd.f32 %v1122_v34, %v710_v35  ;;  %v1246_v37 = vpop.f32.mrb[17].mxu0 }
 0x7bf   :  { %v713_v38 = vpop.f32.mrb[18].mxu0 }
 0x7c0   :  { %v717_v39 = vmul.f32 %v711_v36, %v711_v36  ;;  %v714_v40 = vadd.f32 %v1122_v34, %v713_v38  ;;  %v1247_v41 = vpop.f32.mrb[19].mxu0 }
 0x7c1   :  { %v1137_v41 = vld [vmem:[%s1799_s20] ss:$0 sm:$0xff] }
 0x7c2   :  { %v719_v42 = vmul.f32 %v717_v39, %v711_v36  ;;  %v718_v43 = vmul.f32 %v714_v40, %v714_v40  ;;  %v1318_v39 = vld [vmem:[%s1800_s21] sm:$0xff]  }
 0x7c4   :  { %v721_v44 = vmul.f32 0.044715, %v719_v42  ;;  %v720_v45 = vmul.f32 %v718_v43, %v714_v40 }
 0x7c6   :  { %v723_v46 = vadd.f32 %v721_v44, %v711_v36  ;;  %v722_v47 = vmul.f32 0.044715, %v720_v45 }
 0x7c8   :  { %v725_v48 = vmul.f32 0.7978846, %v723_v46  ;;  %v724_v49 = vadd.f32 %v722_v47, %v714_v40 }
 0x7ca   :  { %1340 = vtanh.f32 %v725_v48  ;;  %v726_v50 = vmul.f32 0.7978846, %v724_v49  ;;  %v1141_v49 = vld [vmem:[%s1801_s22] ss:$0 sm:$0xff] }
 0x7cc   :  { %1342 = vtanh.f32 %v726_v50 }
 0x7d4   :  { %v1341_v51 = vpop.eup %1340 }
 0x7d5   :  { %v729_v52 = vadd.f32 1.0, %v1341_v51 }
 0x7d6   :  { %v1343_v53 = vpop.eup %1342 }
 0x7d7   :  { %v731_v54 = vmul.f32 0.5, %v729_v52  ;;  %v730_v55 = vadd.f32 1.0, %v1343_v53 }
 0x7d9   :  { %v732_v56 = vmul.f32 0.5, %v730_v55  ;;  %v733_v57 = vmul.f32 %v731_v54, %v711_v36 }
 0x7db   :  { %v734_v58 = vmul.f32 %v732_v56, %v714_v40  ;;  %v1319_v40 = vld [vmem:[%s1800_s21 + $0x8] sm:$0xff]  }
 0x7dd   :  { %v735_v59 = vpack.c.bf16 %v734_v58, %v733_v57 }
 0x7df   :  { %1265 = vmatmul.mubr.bf16.vlgmr.msra.gmra.mrb[16].mxu1 %v735_v59 }
 0x8b2   :  { %v841_v61 = vpop.f32.mrb[16].mxu1 }
 0x8b3   :  { %v842_v62 = vadd.f32 %v1126_v60, %v841_v61  ;;  %v1266_v63 = vpop.f32.mrb[17].mxu1 }
 0x8b4   :  { %v844_v0 = vpop.f32.mrb[18].mxu1  ;;  %v1040_v63 = vld [vmem:[%s1826_s30] sm:$0x3] }
 0x8b5   :  { %v845_v2 = vadd.f32 %v1126_v60, %v844_v0  ;;  %v1267_v3 = vpop.f32.mrb[19].mxu1  ;;  %v848_v6 = vadd.f32 %v842_v62, %v1669_v23 }
 0x8b6   :  { %v1049_v3 = vsub.f32 1.0, %v1040_v63 }
 0x8b7   :  { %v852_v7 = vsel %vm107_vm1, %v848_v6, 0.0  ;;  %v849_v4 = vadd.f32 %v845_v2, %v1671_v24 }
 0x8b8   :  { %853 = vadd.xlane.f32.xlu0 %v852_v7 }
 0x8b9   :  { %v855_v5 = vsel %vm107_vm1, %v849_v4, 0.0 }
 0x8ba   :  { %856 = vadd.xlane.f32.xlu1 %v855_v5 }
 0x945   :  { %v854_v8 = vpop.xlane.xlu0 %853 }
 0x946   :  { %v858_v9 = vmul.f32 0.03125, %v854_v8 }
 0x947   :  { %v857_v10 = vpop.xlane.xlu1 %856 }
 0x948   :  { %v860_v11 = vsub.f32 %v848_v6, %v858_v9  ;;  %v859_v12 = vmul.f32 0.03125, %v857_v10 }
 0x94a   :  { %v861_v13 = vsub.f32 %v849_v4, %v859_v12  ;;  %v862_v14 = vmul.f32 %v860_v11, %v860_v11 }
 0x94c   :  { %v864_v15 = vsel %vm107_vm1, %v862_v14, 0.0  ;;  %v863_v16 = vmul.f32 %v861_v13, %v861_v13 }
 0x94d   :  { %865 = vadd.xlane.f32.xlu0 %v864_v15 }
 0x94e   :  { %v867_v17 = vsel %vm107_vm1, %v863_v16, 0.0 }
 0x94f   :  { %868 = vadd.xlane.f32.xlu1 %v867_v17 }
 0x9da   :  { %v866_v20 = vpop.xlane.xlu0 %865 }
 0x9db   :  { %v870_v21 = vmul.f32 0.03125, %v866_v20 }
 0x9dc   :  { %v869_v22 = vpop.xlane.xlu1 %868 }
 0x9dd   :  { %v872_v23 = vadd.f32 1e-05, %v870_v21  ;;  %v871_v24 = vmul.f32 0.03125, %v869_v22 }
 0x9df   :  { %1344 = vrsqrt.f32 %v872_v23  ;;  %v873_v25 = vadd.f32 1e-05, %v871_v24 }
 0x9e1   :  { %1346 = vrsqrt.f32 %v873_v25 }
 0x9e9   :  { %v1345_v26 = vpop.eup %1344 }
 0x9ea   :  { %v876_v27 = vmul.f32 %v1345_v26, %v860_v11 }
 0x9eb   :  { %v1347_v28 = vpop.eup %1346 }
 0x9ec   :  { %v877_v30 = vmul.f32 %v1347_v28, %v861_v13  ;;  %v884_v31 = vmul.f32 %v1135_v29, %v876_v27 }
 0x9ee   :  { %v885_v32 = vmul.f32 %v1135_v29, %v877_v30  ;;  %v892_v35 = vadd.f32 %v1136_v33, %v884_v31 }
 0x9f0   :  { %v893_v34 = vadd.f32 %v1136_v33, %v885_v32 }
 0x9f2   :  { %v895_v36 = vrot.slane %v893_v34, 7 }
 0x9f4   :  { %v898_v37 = vsel %vm897_vm3, %v892_v35, %v895_v36 }
 0x9f5   :  { %v899_v38 = vpack.c.bf16 %v898_v37, %v898_v37 }
 0x9f7   :  { %1273 = vmatmul.mubr.msk.bf16.vlgmr.msra.gmra.mrb[20].mxu0 %vm107_vm1, %v899_v38 }
 0x9f8   :  { %1280 = vmatprep.mubr.msk.bf16.mxu0 %vm1407_vm0, %v1406_v1  ;;  %1277 = vmatpush3.bf16.msra.mxu0 %v1318_v39 }
 0x9f9   :  { %1278 = vmatprep.subr.bf16.mxu0 %v1406_v1  ;;  %v1410_v1 = vmov 0  }
 0x9fa   :  { %1296 = vset.pattern.permute.xlu1 %v1410_v1  ;;  %1297 = vset.pattern.permute.xlu0 %v1410_v1 }
 0x9fc   :  { %1279 = vmatpush3.bf16.msra.mxu0 %v1319_v40 }
 0xaca   :  { %v960_v42 = vpop.f32.mrb[20].mxu0 }
 0xacb   :  { %v961_v43 = vadd.f32 %v1137_v41, %v960_v42  ;;  %v1274_v44 = vpop.f32.mrb[21].mxu0 }
 0xacc   :  { %v963_v45 = vpop.f32.mrb[22].mxu0 }
 0xacd   :  { %1348 = vtanh.f32 %v961_v43  ;;  %v1275_v46 = vpop.f32.mrb[23].mxu0 }
 0xad7   :  { %v1349_v47 = vpop.eup %1348 }
 0xad8   :  { %v967_v48 = vpack.c.bf16 %v1349_v47, %v1349_v47 }
 0xada   :  { %1281 = vmatmul.mubr.msk.bf16.vlgmr.msra.gmra.mrb[24].mxu0 %vm107_vm1, %v967_v48 }
 0xbad   :  { %v1028_v50 = vpop.f32.mrb[24].mxu0 }
 0xbae   :  { %v1029_v51 = vadd.f32 %v1141_v49, %v1028_v50  ;;  %v1282_v52 = vpop.f32.mrb[25].mxu0 }
 0xbaf   :  { %v1031_v53 = vpop.f32.mrb[26].mxu0 }
 0xbb0   :  { %v1145_v54 = vmul.f32 -1.442695, %v1029_v51  ;;  %v1283_v55 = vpop.f32.mrb[27].mxu0 }
 0xbb2   :  { %1350 = vpow2.f32 %v1145_v54 }
 0xbbc   :  { %v1351_v56 = vpop.eup %1350 }
 0xbbd   :  { %v1037_v57 = vadd.f32 1.0, %v1351_v56 }
 0xbbf   :  { %1352 = vrcp.f32 %v1037_v57 }
 0xbc9   :  { %v1353_v58 = vpop.eup %1352 }
 0xbca   :  { %v1041_v59 = vadd.f32 1e-10, %v1353_v58  ;;  %v1045_v60 = vsub.f32 1.0, %v1353_v58  ;;  %v1064_v61 = vsel %vm1063_vm4, %v1353_v58, 0.0 }
 0xbcb   :  { %1065 = vst [vmem:[#allocation2] sm:$0x3] %v1064_v61 }
 0xbcc   :  { %1354 = vlog2.f32 %v1041_v59  ;;  %v1046_v62 = vadd.f32 1e-10, %v1045_v60 }
 0xbce   :  { %1356 = vlog2.f32 %v1046_v62 }
 0xbd6   :  { %v1355_v0 = vpop.eup %1354 }
 0xbd7   :  { %v1043_v2 = vmul.f32 0.6931472, %v1355_v0 }
 0xbd8   :  { %v1357_v6 = vpop.eup %1356 }
 0xbd9   :  { %v1048_v7 = vmul.f32 0.6931472, %v1357_v6  ;;  %v1044_v4 = vmul.f32 %v1043_v2, %v1040_v63 }
 0xbdb   :  { %v1050_v5 = vmul.f32 %v1049_v3, %v1048_v7 }
 0xbdd   :  { %v1051_v8 = vadd.f32 %v1050_v5, %v1044_v4 }
 0xbdf   :  { %v1053_v9 = vsel %vm1052_vm5, %v1051_v8, 0.0 }
 0xbe0   :  { %v1054_v10 = vrot.slane %v1053_v9, 4 }
 0xbe2   :  { %v1055_v11 = vadd.f32 %v1054_v10, %v1053_v9 }
 0xbe4   :  { %v1056_v12 = vrot.slane %v1055_v11, 2 }
 0xbe6   :  { %v1057_v13 = vadd.f32 %v1056_v12, %v1055_v11 }
 0xbe8   :  { %v1058_v14 = vrot.slane %v1057_v13, 1 }
 0xbea   :  { %v1059_v15 = vadd.f32 %v1058_v14, %v1057_v13 }
 0xbec   :  { %v1060_v16 = vsub.f32 0.0, %v1059_v15 }
 0xbee   :  { %v1062_v17 = vmul.f32 0.5, %v1060_v16 }
 0xbf0   :  { %1068 = vperm.xlu1 %1296, %v1062_v17  }
 0xbf1   :  { %1369 = shalt.err (!%p1366_p4)
}
 0xbf2   :  { %s1370_s4 = scalar_lea.hbm %s1802_s23, 32 }
 0xbf3   :  { %p1371_p5 = scmp.ne.s32.totalorder %s1802_s23, %s1370_s4  ;;  %p1374_p6 = scmp.lt.u32.totalorder %s1370_s4, %s1802_s23 }
 0xbf5   :  { %p1376_p7 = pnand %p1374_p6, %p1371_p5 }
 0xbf7   :  { %1379 = shalt.err (!%p1376_p7)
}
 0xbf8   :  { %1081 = dma.vmem_to_hbm [thread:$0]  %s1079_s3, 32, %s1802_s23, [#allocation3]  }
 0xbf9   :  { %s1412_s26 = smov [#allocation4]  }
 0xbfa   :  { %s1088_s11 = sshll.u32 %s1412_s26, 4  ;;  %s1089_s11 = int_to_ptr.vmem [resolvable:$true] %s1088_s11 }
 0xbfb   :  { %s1380_s27 = scalar_lea.vmem %s1089_s11, 16  ;;  %s1384_s12 = scalar_lea.vmem %s1089_s11, 32 }
 0xbfc   :  { %p1381_p8 = scmp.ne.s32.totalorder %s1089_s11, %s1380_s27  ;;  %p1385_p9 = scmp.lt.s32.totalorder %s1089_s11, %s1089_s11 }
 0xbfd   :  { %p1386_p10 = scmp.lt.s32.totalorder %s1384_s12, %s1380_s27 }
 0xbff   :  { %p1387_p11 = por %p1386_p10, %p1385_p9 }
 0xc01   :  { %p1388_p12 = pnand %p1387_p11, %p1381_p8 }
 0xc6f   :  { %v1069_v18 = vpop.permute.xlu1 %1068 }
 0xc70   :  { %1071 = vst [vmem:[#allocation4] sm:$0x1] %v1069_v18 }
 0xc71   :  { %1391 = shalt.err (!%p1388_p12)
}
 0xc72   :  { %s1392_s6 = scalar_lea.hbm %s1803_s24, 16 }
 0xc73   :  { %p1393_p13 = scmp.ne.s32.totalorder %s1803_s24, %s1392_s6  ;;  %p1396_p0 = scmp.lt.u32.totalorder %s1392_s6, %s1803_s24 }
 0xc75   :  { %p1398_p1 = pnand %p1396_p0, %p1393_p13 }
 0xc77   :  { %1401 = shalt.err (!%p1398_p1)
}
 0xc78   :  { %1091 = dma.vmem_to_hbm [thread:$0]  %s1089_s11, 16, %s1803_s24, [#allocation5]  }
 0xc79   :  { %1402 = dma.done.wait [#allocation3], 32  }
 0xc7a   :  { %1403 = vsyncadd [#allocation3], 4294967264 }
 0xc7b   :  { %1404 = dma.done.wait [#allocation5], 16  }
 0xc7c   :  { %1405 = vsyncadd [#allocation5], 4294967280 }
 0xc7d   :  { %1098 = vsyncpa [#allocation3], 1 }
 0xc7e   :  { %1099 = vsyncpa [#allocation5], 1 }

</bundles_post_ra>
